<compile_context>
chip_gen: v7x
topology: tpu7x:2x2x1
jax: 0.10.0
libtpu: 0.0.40
codegen_flags: <defaults>
</compile_context>

<pallas_src>
import jax
import jax.numpy as jnp
from jax import lax
from jax.experimental import pallas as pl
from jax.experimental.pallas import tpu as pltpu

SLOY = 256          # hidden width from the PyTorch module
N_OUT = 128         # lane-padded head width (cols 0..3 are real)
LN_EPS = 1e-5       # nn.LayerNorm default eps


def _round_up(n, m):
    return ((n + m - 1) // m) * m


def _layernorm(h, gamma, beta):
    mu = jnp.mean(h, axis=-1, keepdims=True)
    var = jnp.mean((h - mu) * (h - mu), axis=-1, keepdims=True)
    return (h - mu) * lax.rsqrt(var + LN_EPS) * gamma + beta


def actor_kernel(x_ref, w1_ref, w2_ref, wh_ref, vecs_ref, out_ref):
    # Fused small-param slab: rows are [b1, g1, be1, b2, g2, be2, bh_pad, 0].
    b1 = vecs_ref[0:1, :]
    g1 = vecs_ref[1:2, :]
    be1 = vecs_ref[2:3, :]
    b2 = vecs_ref[3:4, :]
    g2 = vecs_ref[4:5, :]
    be2 = vecs_ref[5:6, :]
    bh = vecs_ref[6:7, 0:N_OUT]

    # Linear(input_dim, 256) -> LayerNorm -> ReLU (bf16 weights, f32 accum)
    x = x_ref[...].astype(jnp.bfloat16)
    h = jnp.dot(x, w1_ref[...], preferred_element_type=jnp.float32) + b1
    h = _layernorm(h, g1, be1)
    h = jnp.maximum(h, 0.0)

    # Linear(256, 256) -> LayerNorm -> ReLU
    h = jnp.dot(h.astype(jnp.bfloat16), w2_ref[...],
                preferred_element_type=jnp.float32) + b2
    h = _layernorm(h, g2, be2)
    h = jnp.maximum(h, 0.0)

    # Fused heads, zero-padded to 128 lanes.
    # Real columns: [inv_mu, inv_sigma, prc_mu, prc_sigma, 0, 0, ...]
    heads = jnp.dot(h.astype(jnp.bfloat16), wh_ref[...],
                    preferred_element_type=jnp.float32) + bh

    # sigma transform only on the real sigma columns {1, 3}:
    #   sigma = sqrt(1 + sigma^2) - 1, clamp(min=0.01)
    col = lax.broadcasted_iota(jnp.int32, heads.shape, dimension=1)
    is_sigma = (col == 1) | (col == 3)
    sig = jnp.maximum(jnp.sqrt(1.0 + heads * heads) - 1.0, 0.01)
    out_ref[...] = jnp.where(is_sigma, sig, heads)
    # TODO(synk): the torch.isnan asserts on inv_mu/prc_mu are host-side
    # runtime checks with no clean in-kernel equivalent; omitted here.


def ppo_c_actor_forward(x, params, *, tb=512):
    """x: (B, input_dim) f32.  Returns (inv_mu, inv_sigma, prc_mu, prc_sigma)."""
    w1, w2, wh, vecs = params
    B, D = x.shape

    # Batch tile: cap at `tb`, keep a multiple of 8 sublanes, pad the batch.
    TB = min(tb, _round_up(max(B, 1), 8))
    Bp = _round_up(B, TB)
    if Bp != B:
        x = jnp.pad(x, ((0, Bp - B), (0, 0)))   # garbage rows sliced off below

    out = pl.pallas_call(
        actor_kernel,
        out_shape=jax.ShapeDtypeStruct((Bp, N_OUT), jnp.float32),
        grid_spec=pltpu.PrefetchScalarGridSpec(
            num_scalar_prefetch=0,
            grid=(Bp // TB,),
            in_specs=[
                # streamed activations (double-buffered by Pallas)
                pl.BlockSpec((TB, D), lambda i: (i, 0)),
                # resident weights / params (constant index_map)
                pl.BlockSpec((D, SLOY), lambda i: (0, 0)),
                pl.BlockSpec((SLOY, SLOY), lambda i: (0, 0)),
                pl.BlockSpec((SLOY, N_OUT), lambda i: (0, 0)),
                pl.BlockSpec((8, SLOY), lambda i: (0, 0)),
            ],
            out_specs=pl.BlockSpec((TB, N_OUT), lambda i: (i, 0)),
        ),
        compiler_params=pltpu.CompilerParams(
            dimension_semantics=("parallel",),
        ),
    )(x, w1, w2, wh, vecs)

    inv_mu = out[:B, 0:1]
    inv_sigma = out[:B, 1:2]
    prc_mu = out[:B, 2:3]
    prc_sigma = out[:B, 3:4]
    return inv_mu, inv_sigma, prc_mu, prc_sigma


def init_params(key, input_dim):
    """PyTorch-style init; weights stored bf16, small params fused into a slab."""
    ks = jax.random.split(key, 6)
    s1 = 1.0 / (input_dim ** 0.5)
    s2 = 1.0 / (SLOY ** 0.5)

    w1 = jax.random.uniform(ks[0], (input_dim, SLOY), jnp.float32, -s1, s1)
    b1 = jax.random.uniform(ks[1], (SLOY,), jnp.float32, -s1, s1)
    g1 = jnp.ones((SLOY,), jnp.float32)      # LayerNorm weight init = 1
    be1 = jnp.zeros((SLOY,), jnp.float32)    # LayerNorm bias init = 0

    w2 = jax.random.uniform(ks[2], (SLOY, SLOY), jnp.float32, -s2, s2)
    b2 = jax.random.uniform(ks[3], (SLOY,), jnp.float32, -s2, s2)
    g2 = jnp.ones((SLOY,), jnp.float32)
    be2 = jnp.zeros((SLOY,), jnp.float32)

    # 4 heads (256 -> 1 each) fused into (256, 4), zero-padded to 128 lanes.
    wh4 = jax.random.uniform(ks[4], (SLOY, 4), jnp.float32, -s2, s2)
    bh4 = jax.random.uniform(ks[5], (4,), jnp.float32, -s2, s2)
    wh = jnp.zeros((SLOY, N_OUT), jnp.float32).at[:, :4].set(wh4)
    bh = jnp.zeros((N_OUT,), jnp.float32).at[:4].set(bh4)

    # Fused small-param slab (8, 256).
    vecs = jnp.zeros((8, SLOY), jnp.float32)
    vecs = vecs.at[0].set(b1).at[1].set(g1).at[2].set(be1)
    vecs = vecs.at[3].set(b2).at[4].set(g2).at[5].set(be2)
    vecs = vecs.at[6, :N_OUT].set(bh)

    return (w1.astype(jnp.bfloat16),
            w2.astype(jnp.bfloat16),
            wh.astype(jnp.bfloat16),
            vecs)


def reference_forward(x, params):
    """Pure-JAX reference computing the same (bf16-weight) math."""
    w1, w2, wh, vecs = params
    b1, g1, be1, b2, g2, be2 = (vecs[i] for i in range(6))
    bh = vecs[6, :N_OUT]

    h = jnp.dot(x.astype(jnp.bfloat16), w1, preferred_element_type=jnp.float32) + b1
    h = jnp.maximum(_layernorm(h, g1, be1), 0.0)
    h = jnp.dot(h.astype(jnp.bfloat16), w2, preferred_element_type=jnp.float32) + b2
    h = jnp.maximum(_layernorm(h, g2, be2), 0.0)
    heads = jnp.dot(h.astype(jnp.bfloat16), wh,
                    preferred_element_type=jnp.float32) + bh

    inv_mu, inv_sigma = heads[:, 0:1], heads[:, 1:2]
    prc_mu, prc_sigma = heads[:, 2:3], heads[:, 3:4]
    inv_sigma = jnp.maximum(jnp.sqrt(1.0 + inv_sigma ** 2) - 1.0, 0.01)
    prc_sigma = jnp.maximum(jnp.sqrt(1.0 + prc_sigma ** 2) - 1.0, 0.01)
    return inv_mu, inv_sigma, prc_mu, prc_sigma


if __name__ == "__main__":
    key = jax.random.PRNGKey(0)
    k_x, k_p = jax.random.split(key)

    batch = 10          # deliberately not a multiple of 8: exercises batch padding
    input_dim = 32
    x = jax.random.normal(k_x, (batch, input_dim), jnp.float32)
    params = init_params(k_p, input_dim)

    outs = ppo_c_actor_forward(x, params)
    outs = jax.block_until_ready(outs)

    refs = reference_forward(x, params)
    for o, r in zip(outs, refs):
        assert o.shape == (batch, 1)
        assert jnp.allclose(o, r, atol=1e-3, rtol=1e-3), (o, r)

    print("KERNEL_OK")
</pallas_src>

<mosaic_0001>
module attributes {stable_mosaic.version = 11 : i64} {
  func.func @actor_kernel(%arg0: i32, %arg1: memref<16x32xf32, #tpu.memory_space<vmem>>, %arg2: memref<32x256xbf16, #tpu.memory_space<vmem>>, %arg3: memref<256x256xbf16, #tpu.memory_space<vmem>>, %arg4: memref<256x128xbf16, #tpu.memory_space<vmem>>, %arg5: memref<8x256xf32, #tpu.memory_space<vmem>>, %arg6: memref<16x128xf32, #tpu.memory_space<vmem>>) attributes {dimension_semantics = [#tpu.dimension_semantics<parallel>], iteration_bounds = array<i64: 1>, scalar_prefetch = 0 : i64, scratch_operands = 0 : i64, tpu.core_type = #tpu.core_type<tc>, window_params = [{transform_indices = @transform_0, window_bounds = array<i64: 16, 32>}, {pipeline_mode = #tpu.pipeline_mode<synchronous>, transform_indices = @transform_1, window_bounds = array<i64: 32, 256>}, {pipeline_mode = #tpu.pipeline_mode<synchronous>, transform_indices = @transform_2, window_bounds = array<i64: 256, 256>}, {pipeline_mode = #tpu.pipeline_mode<synchronous>, transform_indices = @transform_3, window_bounds = array<i64: 256, 128>}, {pipeline_mode = #tpu.pipeline_mode<synchronous>, transform_indices = @transform_4, window_bounds = array<i64: 8, 256>}, {transform_indices = @transform_5, window_bounds = array<i64: 16, 128>}]} {
    %c0 = arith.constant 0 : index
    %c0_0 = arith.constant 0 : index
    %0 = vector.load %arg5[%c0, %c0_0] : memref<8x256xf32, #tpu.memory_space<vmem>>, vector<1x256xf32>
    %c1 = arith.constant 1 : index
    %c0_1 = arith.constant 0 : index
    %1 = vector.load %arg5[%c1, %c0_1] : memref<8x256xf32, #tpu.memory_space<vmem>>, vector<1x256xf32>
    %c2 = arith.constant 2 : index
    %c0_2 = arith.constant 0 : index
    %2 = vector.load %arg5[%c2, %c0_2] : memref<8x256xf32, #tpu.memory_space<vmem>>, vector<1x256xf32>
    %c3 = arith.constant 3 : index
    %c0_3 = arith.constant 0 : index
    %3 = vector.load %arg5[%c3, %c0_3] : memref<8x256xf32, #tpu.memory_space<vmem>>, vector<1x256xf32>
    %c4 = arith.constant 4 : index
    %c0_4 = arith.constant 0 : index
    %4 = vector.load %arg5[%c4, %c0_4] : memref<8x256xf32, #tpu.memory_space<vmem>>, vector<1x256xf32>
    %c5 = arith.constant 5 : index
    %c0_5 = arith.constant 0 : index
    %5 = vector.load %arg5[%c5, %c0_5] : memref<8x256xf32, #tpu.memory_space<vmem>>, vector<1x256xf32>
    %c6 = arith.constant 6 : index
    %c0_6 = arith.constant 0 : index
    %6 = vector.load %arg5[%c6, %c0_6] : memref<8x256xf32, #tpu.memory_space<vmem>>, vector<1x128xf32>
    %c0_7 = arith.constant 0 : index
    %c0_8 = arith.constant 0 : index
    %7 = vector.load %arg1[%c0_7, %c0_8] : memref<16x32xf32, #tpu.memory_space<vmem>>, vector<16x32xf32>
    %8 = arith.truncf %7 : vector<16x32xf32> to vector<16x32xbf16>
    %c0_9 = arith.constant 0 : index
    %c0_10 = arith.constant 0 : index
    %9 = vector.load %arg2[%c0_9, %c0_10] : memref<32x256xbf16, #tpu.memory_space<vmem>>, vector<32x256xbf16>
    %cst = arith.constant dense<0.000000e+00> : vector<16x256xf32>
    %10 = tpu.matmul %8, %9, %cst {dimension_numbers = #tpu.dot_dimension_numbers<[1], [0], [0], [1], [0, 0, 1, 1], [], []>} : vector<16x32xbf16>, vector<32x256xbf16>, vector<16x256xf32> -> vector<16x256xf32>
    %11 = vector.broadcast %0 : vector<1x256xf32> to vector<16x256xf32>
    %12 = arith.addf %10, %11 : vector<16x256xf32>
    %cst_11 = arith.constant dense<0.000000e+00> : vector<16xf32>
    %13 = vector.multi_reduction <add>, %12, %cst_11 [1] : vector<16x256xf32> to vector<16xf32>
    %14 = vector.shape_cast %13 : vector<16xf32> to vector<16x1xf32>
    %cst_12 = arith.constant 2.560000e+02 : f32
    %15 = vector.broadcast %cst_12 : f32 to vector<16x1xf32>
    %16 = arith.divf %14, %15 : vector<16x1xf32>
    %17 = vector.broadcast %16 : vector<16x1xf32> to vector<16x256xf32>
    %18 = arith.subf %12, %17 : vector<16x256xf32>
    %19 = vector.broadcast %16 : vector<16x1xf32> to vector<16x256xf32>
    %20 = arith.subf %12, %19 : vector<16x256xf32>
    %21 = arith.mulf %18, %20 : vector<16x256xf32>
    %cst_13 = arith.constant dense<0.000000e+00> : vector<16xf32>
    %22 = vector.multi_reduction <add>, %21, %cst_13 [1] : vector<16x256xf32> to vector<16xf32>
    %23 = vector.shape_cast %22 : vector<16xf32> to vector<16x1xf32>
    %cst_14 = arith.constant 2.560000e+02 : f32
    %24 = vector.broadcast %cst_14 : f32 to vector<16x1xf32>
    %25 = arith.divf %23, %24 : vector<16x1xf32>
    %26 = vector.broadcast %16 : vector<16x1xf32> to vector<16x256xf32>
    %27 = arith.subf %12, %26 : vector<16x256xf32>
    %cst_15 = arith.constant 9.99999974E-6 : f32
    %28 = vector.broadcast %cst_15 : f32 to vector<16x1xf32>
    %29 = arith.addf %25, %28 : vector<16x1xf32>
    %30 = math.rsqrt %29 : vector<16x1xf32>
    %31 = vector.broadcast %30 : vector<16x1xf32> to vector<16x256xf32>
    %32 = arith.mulf %27, %31 : vector<16x256xf32>
    %33 = vector.broadcast %1 : vector<1x256xf32> to vector<16x256xf32>
    %34 = arith.mulf %32, %33 : vector<16x256xf32>
    %35 = vector.broadcast %2 : vector<1x256xf32> to vector<16x256xf32>
    %36 = arith.addf %34, %35 : vector<16x256xf32>
    %cst_16 = arith.constant 0.000000e+00 : f32
    %37 = vector.broadcast %cst_16 : f32 to vector<16x256xf32>
    %38 = arith.maximumf %36, %37 : vector<16x256xf32>
    %39 = arith.truncf %38 : vector<16x256xf32> to vector<16x256xbf16>
    %c0_17 = arith.constant 0 : index
    %c0_18 = arith.constant 0 : index
    %40 = vector.load %arg3[%c0_17, %c0_18] : memref<256x256xbf16, #tpu.memory_space<vmem>>, vector<256x256xbf16>
    %cst_19 = arith.constant dense<0.000000e+00> : vector<16x256xf32>
    %41 = tpu.matmul %39, %40, %cst_19 {dimension_numbers = #tpu.dot_dimension_numbers<[1], [0], [0], [1], [0, 0, 1, 1], [], []>} : vector<16x256xbf16>, vector<256x256xbf16>, vector<16x256xf32> -> vector<16x256xf32>
    %42 = vector.broadcast %3 : vector<1x256xf32> to vector<16x256xf32>
    %43 = arith.addf %41, %42 : vector<16x256xf32>
    %cst_20 = arith.constant dense<0.000000e+00> : vector<16xf32>
    %44 = vector.multi_reduction <add>, %43, %cst_20 [1] : vector<16x256xf32> to vector<16xf32>
    %45 = vector.shape_cast %44 : vector<16xf32> to vector<16x1xf32>
    %cst_21 = arith.constant 2.560000e+02 : f32
    %46 = vector.broadcast %cst_21 : f32 to vector<16x1xf32>
    %47 = arith.divf %45, %46 : vector<16x1xf32>
    %48 = vector.broadcast %47 : vector<16x1xf32> to vector<16x256xf32>
    %49 = arith.subf %43, %48 : vector<16x256xf32>
    %50 = vector.broadcast %47 : vector<16x1xf32> to vector<16x256xf32>
    %51 = arith.subf %43, %50 : vector<16x256xf32>
    %52 = arith.mulf %49, %51 : vector<16x256xf32>
    %cst_22 = arith.constant dense<0.000000e+00> : vector<16xf32>
    %53 = vector.multi_reduction <add>, %52, %cst_22 [1] : vector<16x256xf32> to vector<16xf32>
    %54 = vector.shape_cast %53 : vector<16xf32> to vector<16x1xf32>
    %cst_23 = arith.constant 2.560000e+02 : f32
    %55 = vector.broadcast %cst_23 : f32 to vector<16x1xf32>
    %56 = arith.divf %54, %55 : vector<16x1xf32>
    %57 = vector.broadcast %47 : vector<16x1xf32> to vector<16x256xf32>
    %58 = arith.subf %43, %57 : vector<16x256xf32>
    %cst_24 = arith.constant 9.99999974E-6 : f32
    %59 = vector.broadcast %cst_24 : f32 to vector<16x1xf32>
    %60 = arith.addf %56, %59 : vector<16x1xf32>
    %61 = math.rsqrt %60 : vector<16x1xf32>
    %62 = vector.broadcast %61 : vector<16x1xf32> to vector<16x256xf32>
    %63 = arith.mulf %58, %62 : vector<16x256xf32>
    %64 = vector.broadcast %4 : vector<1x256xf32> to vector<16x256xf32>
    %65 = arith.mulf %63, %64 : vector<16x256xf32>
    %66 = vector.broadcast %5 : vector<1x256xf32> to vector<16x256xf32>
    %67 = arith.addf %65, %66 : vector<16x256xf32>
    %cst_25 = arith.constant 0.000000e+00 : f32
    %68 = vector.broadcast %cst_25 : f32 to vector<16x256xf32>
    %69 = arith.maximumf %67, %68 : vector<16x256xf32>
    %70 = arith.truncf %69 : vector<16x256xf32> to vector<16x256xbf16>
    %c0_26 = arith.constant 0 : index
    %c0_27 = arith.constant 0 : index
    %71 = vector.load %arg4[%c0_26, %c0_27] : memref<256x128xbf16, #tpu.memory_space<vmem>>, vector<256x128xbf16>
    %cst_28 = arith.constant dense<0.000000e+00> : vector<16x128xf32>
    %72 = tpu.matmul %70, %71, %cst_28 {dimension_numbers = #tpu.dot_dimension_numbers<[1], [0], [0], [1], [0, 0, 1, 1], [], []>} : vector<16x256xbf16>, vector<256x128xbf16>, vector<16x128xf32> -> vector<16x128xf32>
    %73 = vector.broadcast %6 : vector<1x128xf32> to vector<16x128xf32>
    %74 = arith.addf %72, %73 : vector<16x128xf32>
    %75 = tpu.iota {dimensions = array<i32: 1>} : vector<16x128xi32>
    %c1_i32 = arith.constant 1 : i32
    %76 = vector.broadcast %c1_i32 : i32 to vector<16x128xi32>
    %77 = arith.cmpi eq, %75, %76 : vector<16x128xi32>
    %c3_i32 = arith.constant 3 : i32
    %78 = vector.broadcast %c3_i32 : i32 to vector<16x128xi32>
    %79 = arith.cmpi eq, %75, %78 : vector<16x128xi32>
    %80 = arith.ori %77, %79 : vector<16x128xi1>
    %81 = arith.mulf %74, %74 : vector<16x128xf32>
    %cst_29 = arith.constant 1.000000e+00 : f32
    %82 = vector.broadcast %cst_29 : f32 to vector<16x128xf32>
    %83 = arith.addf %82, %81 : vector<16x128xf32>
    %84 = math.sqrt %83 : vector<16x128xf32>
    %cst_30 = arith.constant 1.000000e+00 : f32
    %85 = vector.broadcast %cst_30 : f32 to vector<16x128xf32>
    %86 = arith.subf %84, %85 : vector<16x128xf32>
    %cst_31 = arith.constant 0.00999999977 : f32
    %87 = vector.broadcast %cst_31 : f32 to vector<16x128xf32>
    %88 = arith.maximumf %86, %87 : vector<16x128xf32>
    %89 = arith.select %80, %88, %74 : vector<16x128xi1>, vector<16x128xf32>
    %c0_32 = arith.constant 0 : index
    %c0_33 = arith.constant 0 : index
    %90 = vector.load %arg6[%c0_32, %c0_33] : memref<16x128xf32, #tpu.memory_space<vmem>>, vector<16x128xf32>
    tpu.vector_store %arg6[%c0_32, %c0_33], %89 {strides = array<i32>} : memref<16x128xf32, #tpu.memory_space<vmem>>, vector<16x128xf32>,
    return
  }
  func.func @transform_0(%arg0: i32) -> (i32, i32) {
    %c0_i32 = arith.constant 0 : i32
    %c0_i32_0 = arith.constant 0 : i32
    return %arg0, %c0_i32 : i32, i32
  }
  func.func @transform_1(%arg0: i32) -> (i32, i32) {
    %c0_i32 = arith.constant 0 : i32
    %c0_i32_0 = arith.constant 0 : i32
    %c0_i32_1 = arith.constant 0 : i32
    return %c0_i32, %c0_i32_0 : i32, i32
  }
  func.func @transform_2(%arg0: i32) -> (i32, i32) {
    %c0_i32 = arith.constant 0 : i32
    %c0_i32_0 = arith.constant 0 : i32
    %c0_i32_1 = arith.constant 0 : i32
    return %c0_i32, %c0_i32_0 : i32, i32
  }
  func.func @transform_3(%arg0: i32) -> (i32, i32) {
    %c0_i32 = arith.constant 0 : i32
    %c0_i32_0 = arith.constant 0 : i32
    %c0_i32_1 = arith.constant 0 : i32
    return %c0_i32, %c0_i32_0 : i32, i32
  }
  func.func @transform_4(%arg0: i32) -> (i32, i32) {
    %c0_i32 = arith.constant 0 : i32
    %c0_i32_0 = arith.constant 0 : i32
    %c0_i32_1 = arith.constant 0 : i32
    return %c0_i32, %c0_i32_0 : i32, i32
  }
  func.func @transform_5(%arg0: i32) -> (i32, i32) {
    %c0_i32 = arith.constant 0 : i32
    %c0_i32_0 = arith.constant 0 : i32
    return %arg0, %c0_i32 : i32, i32
  }
}

</mosaic_0001>

<bundles_post_ra>
// kernel: tpu_custom_call.1
= control target key start
LH: loop header
LB: loop body
LE: loop exit
PB: predicated region body
PF: predicated region fallthrough
CT: control target
= control target key end

     0   :  { %10 = vsyncpa [#allocation3], 0  ;;  %s1254_s0 = inlined_call_operand.hbm [shape: f32[16,32], index: 0, kind: input, shape index: {}]   ;;  %s1255_s1 = inlined_call_operand.hbm [shape: bf16[32,256], index: 1, kind: input, shape index: {}]   ;;  %s1256_s2 = inlined_call_operand.hbm [shape: bf16[256,256], index: 2, kind: input, shape index: {}]   ;;  %s1257_s3 = inlined_call_operand.hbm [shape: bf16[256,128], index: 3, kind: input, shape index: {}]   ;;  %s1258_s4 = inlined_call_operand.hbm [shape: f32[8,256], index: 4, kind: input, shape index: {}]   ;;  %s1259_s5 = inlined_call_operand.hbm [shape: f32[16,128], index: 5, kind: output, shape index: {}]  }
   0x1   :  { %11 = vsyncpa [#allocation6], 0 }
   0x2   :  { %12 = vsyncpa [#allocation9], 0 }
   0x3   :  { %13 = vsyncpa [#allocation4], 0  ;;  %s1097_s18 = smov [#allocation5]   ;;  %s1098_s20 = smov [#allocation8]  }
   0x4   :  { %s31_s19 = sshll.u32 %s1097_s18, 4  ;;  %s55_s21 = sshll.u32 %s1098_s20, 4  ;;  %s32_s19 = int_to_ptr.vmem [resolvable:$true] %s31_s19  ;;  %s1138_s21 = int_to_ptr.vmem [resolvable:$true] %s55_s21 }
   0x5   :  { %s957_s24 = scalar_lea.hbm %s1255_s1, 512 }
   0x6   :  { %p958_p0 = scmp.ne.s32.totalorder %s1255_s1, %s957_s24  ;;  %p961_p1 = scmp.lt.u32.totalorder %s957_s24, %s1255_s1 }
   0x8   :  { %p963_p2 = pnand %p961_p1, %p958_p0 }
   0xa   :  { %966 = shalt.err (!%p963_p2)
}
   0xb   :  { %s967_s29 = scalar_lea.vmem %s32_s19, 512  ;;  %p972_p4 = scmp.lt.s32.totalorder %s32_s19, %s32_s19 }
   0xc   :  { %p968_p3 = scmp.ne.s32.totalorder %s32_s19, %s967_s29  ;;  %p973_p5 = scmp.lt.s32.totalorder %s967_s29, %s967_s29 }
   0xe   :  { %p974_p6 = por %p973_p5, %p972_p4 }
  0x10   :  { %p975_p7 = pnand %p974_p6, %p968_p3 }
  0x12   :  { %978 = shalt.err (!%p975_p7)
}
  0x13   :  { %s1099_s30 = smov 128   ;;  %s1100_s6 = smov 8  }
  0x14   :  { %37 = dma.hbm_to_vmem [thread:$0]  %s1255_s1, 512, %s32_s19, [#allocation6], %s1099_s30, %s1099_s30, %s1100_s6  }
  0x15   :  { %s979_s11 = scalar_lea.hbm %s1257_s3, 2048 }
  0x16   :  { %p980_p8 = scmp.ne.s32.totalorder %s1257_s3, %s979_s11  ;;  %p983_p9 = scmp.lt.u32.totalorder %s979_s11, %s1257_s3 }
  0x18   :  { %p985_p10 = pnand %p983_p9, %p980_p8 }
  0x1a   :  { %988 = shalt.err (!%p985_p10)
}
  0x1b   :  { %s989_s16 = scalar_lea.vmem %s1138_s21, 2048  ;;  %p994_p12 = scmp.lt.s32.totalorder %s1138_s21, %s1138_s21 }
  0x1c   :  { %p990_p11 = scmp.ne.s32.totalorder %s1138_s21, %s989_s16  ;;  %p995_p13 = scmp.lt.s32.totalorder %s989_s16, %s989_s16 }
  0x1e   :  { %p996_p0 = por %p995_p13, %p994_p12 }
  0x20   :  { %p997_p1 = pnand %p996_p0, %p990_p11 }
  0x22   :  { %1000 = shalt.err (!%p997_p1)
}
  0x23   :  { %s1101_s1 = smov 64   ;;  %s1102_s17 = smov 4  }
  0x24   :  { %61 = dma.hbm_to_vmem [thread:$0]  %s1257_s3, 2048, %s1138_s21, [#allocation9], %s1101_s1, %s1101_s1, %s1102_s17  }
  0x25   :  { %s1103_s20 = smov [#allocation2]   ;;  %s1104_s23 = smov [#allocation7]  }
  0x26   :  { %s19_s22 = sshll.u32 %s1103_s20, 4  ;;  %s43_s24 = sshll.u32 %s1104_s23, 4  ;;  %s20_s22 = int_to_ptr.vmem [resolvable:$true] %s19_s22  ;;  %s1172_s24 = int_to_ptr.vmem [resolvable:$true] %s43_s24 }
  0x27   :  { %s1001_s27 = scalar_lea.hbm %s1254_s0, 256 }
  0x28   :  { %p1002_p2 = scmp.ne.s32.totalorder %s1254_s0, %s1001_s27  ;;  %p1005_p3 = scmp.lt.u32.totalorder %s1001_s27, %s1254_s0 }
  0x2a   :  { %p1007_p4 = pnand %p1005_p3, %p1002_p2 }
  0x2c   :  { %1010 = shalt.err (!%p1007_p4)
}
  0x2d   :  { %s1011_s3 = scalar_lea.vmem %s20_s22, 256  ;;  %p1016_p6 = scmp.lt.s32.totalorder %s20_s22, %s20_s22 }
  0x2e   :  { %p1012_p5 = scmp.ne.s32.totalorder %s20_s22, %s1011_s3  ;;  %p1017_p7 = scmp.lt.s32.totalorder %s1011_s3, %s1011_s3 }
  0x30   :  { %p1018_p8 = por %p1017_p7, %p1016_p6 }
  0x32   :  { %p1019_p9 = pnand %p1018_p8, %p1012_p5 }
  0x34   :  { %1022 = shalt.err (!%p1019_p9)
}
  0x35   :  { %25 = dma.hbm_to_vmem [thread:$0]  %s1254_s0, 256, %s20_s22, [#allocation3], %s1099_s30, %s1099_s30, %s1100_s6  }
  0x36   :  { %s1023_s12 = scalar_lea.hbm %s1256_s2, 4096 }
  0x37   :  { %p1024_p10 = scmp.ne.s32.totalorder %s1256_s2, %s1023_s12  ;;  %p1027_p11 = scmp.lt.u32.totalorder %s1023_s12, %s1256_s2 }
  0x39   :  { %p1029_p12 = pnand %p1027_p11, %p1024_p10 }
  0x3b   :  { %1032 = shalt.err (!%p1029_p12)
}
  0x3c   :  { %s1033_s1 = scalar_lea.vmem %s1172_s24, 4096  ;;  %p1038_p0 = scmp.lt.s32.totalorder %s1172_s24, %s1172_s24 }
  0x3d   :  { %p1034_p13 = scmp.ne.s32.totalorder %s1172_s24, %s1033_s1  ;;  %p1039_p1 = scmp.lt.s32.totalorder %s1033_s1, %s1033_s1 }
  0x3f   :  { %p1040_p2 = por %p1039_p1, %p1038_p0 }
  0x41   :  { %p1041_p3 = pnand %p1040_p2, %p1034_p13 }
  0x43   :  { %1044 = shalt.err (!%p1041_p3)
}
  0x44   :  { %49 = dma.hbm_to_vmem [thread:$0]  %s1256_s2, 4096, %s1172_s24, [#allocation6], %s1099_s30, %s1099_s30, %s1100_s6  }
  0x45   :  { %s1105_s18 = smov [#allocation10]   ;;  %s1045_s23 = scalar_lea.hbm %s1258_s4, 256 }
  0x46   :  { %s68_s19 = sshll.u32 %s1105_s18, 4  ;;  %p1046_p4 = scmp.ne.s32.totalorder %s1258_s4, %s1045_s23  ;;  %s69_s19 = int_to_ptr.vmem [resolvable:$true] %s68_s19 }
  0x47   :  { %p1049_p5 = scmp.lt.u32.totalorder %s1045_s23, %s1258_s4 }
  0x49   :  { %p1051_p6 = pnand %p1049_p5, %p1046_p4 }
  0x4b   :  { %1054 = shalt.err (!%p1051_p6)
}
  0x4c   :  { %s1055_s29 = scalar_lea.vmem %s69_s19, 256  ;;  %p1060_p8 = scmp.lt.s32.totalorder %s69_s19, %s69_s19 }
  0x4d   :  { %p1056_p7 = scmp.ne.s32.totalorder %s69_s19, %s1055_s29  ;;  %p1061_p9 = scmp.lt.s32.totalorder %s1055_s29, %s1055_s29 }
  0x4f   :  { %p1062_p10 = por %p1061_p9, %p1060_p8 }
  0x51   :  { %p1063_p11 = pnand %p1062_p10, %p1056_p7 }
  0x53   :  { %1066 = shalt.err (!%p1063_p11)
}
  0x54   :  { %71 = dma.hbm_to_vmem [thread:$0]  %s1258_s4, 256, %s69_s19, [#allocation9]  }
  0x55   :  { %1089 = dma.done.wait [#allocation3], 256  }
  0x56   :  { %1090 = vsyncadd [#allocation3], 4294967040 }
  0x57   :  { %1091 = dma.done.wait [#allocation6], 4608  }
  0x58   :  { %1092 = vsyncadd [#allocation6], 4294962688 }
  0x59   :  { %1093 = dma.done.wait [#allocation9], 2304  }
  0x5a   :  { %1094 = vsyncadd [#allocation9], 4294964992  ;;  %v1106_v0 = vmov 0   ;;  %v875_v1 = vld [vmem:[#allocation5 + $0x4] ss:$8 sps:$4 sm:$0xff]   ;;  %v100_v5 = vld [vmem:[#allocation2] sm:$0xff]  ;;  %v108_v8 = vlaneseq }
  0x5b   :  { %174 = vmatprep.mubr.bf16.mxu0 %v1106_v0  ;;  %v877_v2 = vld [vmem:[#allocation5] ss:$8 sps:$4 sm:$0xff]   ;;  %142 = vmatprep.subr.bf16.mxu0 %v875_v1  ;;  %v878_v3 = vld [vmem:[#allocation5 + $0x14] ss:$8 sps:$4 sm:$0xff]   ;;  %v880_v4 = vld [vmem:[#allocation5 + $0x10] ss:$8 sps:$4 sm:$0xff]  }
  0x5c   :  { %143 = vmatpush1.bf16.msra.mxu0 %v877_v2  ;;  %v101_v6 = vld [vmem:[#allocation2 + $0x8] sm:$0xff]  ;;  %vm138_vm0 = vcmask 261120   ;;  %v109_v9 = vshrl.u32 %v108_v8, 7  ;;  %v88_v11 = vld [vmem:[#allocation10] ss:$8 sm:$0x3] }
  0x5d   :  { %144 = vmatprep.subr.bf16.mxu0 %v878_v3  ;;  %v102_v7 = vpack.c.bf16 %v101_v6, %v100_v5  ;;  %v881_v25 = vld [vmem:[#allocation7 + $0x4] ss:$8 sps:$4 sm:$0xff]   ;;  %v883_v26 = vld [vmem:[#allocation7] ss:$8 sps:$4 sm:$0xff]   ;;  %v884_v27 = vld [vmem:[#allocation7 + $0x14] ss:$8 sps:$4 sm:$0xff]  }
  0x5e   :  { %v1222_v10 = vsub.s32 0, %v109_v9  ;;  %v1224_v12 = vsub.s32 1, %v109_v9  ;;  %457 = vmatprep.subr.bf16.mxu1 %v881_v25  ;;  %v886_v28 = vld [vmem:[#allocation7 + $0x10] ss:$8 sps:$4 sm:$0xff]   ;;  %v887_v29 = vld [vmem:[#allocation7 + $0x24] ss:$8 sps:$4 sm:$0xff]  }
  0x5f   :  { %458 = vmatpush1.bf16.msra.mxu1 %v883_v26  ;;  %v889_v30 = vld [vmem:[#allocation7 + $0x20] ss:$8 sps:$4 sm:$0xff]   ;;  %v890_v31 = vld [vmem:[#allocation7 + $0x34] ss:$8 sps:$4 sm:$0xff]   ;;  %v892_v32 = vld [vmem:[#allocation7 + $0x30] ss:$8 sps:$4 sm:$0xff]  }
  0x60   :  { %145 = vmatpush1.bf16.msra.mxu0 %v880_v4  ;;  %v111_v13 = vrot.slane %v88_v11, %v1222_v10  ;;  %v115_v14 = vrot.slane %v88_v11, %v1224_v12  ;;  %459 = vmatprep.subr.bf16.mxu1 %v884_v27  ;;  %v893_v33 = vld [vmem:[#allocation7 + $0x44] ss:$8 sps:$4 sm:$0xff]   ;;  %v895_v34 = vld [vmem:[#allocation7 + $0x40] ss:$8 sps:$4 sm:$0xff]   ;;  %v896_v35 = vld [vmem:[#allocation7 + $0x54] ss:$8 sps:$4 sm:$0xff]  }
  0x61   :  { %v898_v36 = vld [vmem:[#allocation7 + $0x50] ss:$8 sps:$4 sm:$0xff]   ;;  %v899_v37 = vld [vmem:[#allocation7 + $0x64] ss:$8 sps:$4 sm:$0xff]   ;;  %v901_v38 = vld [vmem:[#allocation7 + $0x60] ss:$8 sps:$4 sm:$0xff]  }
  0x62   :  { %v902_v39 = vld [vmem:[#allocation7 + $0x74] ss:$8 sps:$4 sm:$0xff]   ;;  %v904_v40 = vld [vmem:[#allocation7 + $0x70] ss:$8 sps:$4 sm:$0xff]   ;;  %v905_v41 = vld [vmem:[#allocation7 + $0x84] ss:$8 sps:$4 sm:$0xff]  }
  0x63   :  { %791 = vmatmul.mubr.msk.bf16.vlgmr.msra.gmra.mrb[0].mxu0 %vm138_vm0, %v102_v7  ;;  %460 = vmatpush1.bf16.msra.mxu1 %v886_v28  ;;  %v907_v42 = vld [vmem:[#allocation7 + $0x80] ss:$8 sps:$4 sm:$0xff]   ;;  %v908_v57 = vld [vmem:[#allocation7 + $0x94] ss:$8 sps:$4 sm:$0xff]   ;;  %v910_v58 = vld [vmem:[#allocation7 + $0x90] ss:$8 sps:$4 sm:$0xff]  }
  0x64   :  { %461 = vmatprep.subr.bf16.mxu1 %v887_v29  ;;  %v911_v59 = vld [vmem:[#allocation7 + $0xa4] ss:$8 sps:$4 sm:$0xff]   ;;  %v913_v60 = vld [vmem:[#allocation7 + $0xa0] ss:$8 sps:$4 sm:$0xff]   ;;  %v914_v61 = vld [vmem:[#allocation7 + $0xb4] ss:$8 sps:$4 sm:$0xff]  }
  0x65   :  { %v916_v62 = vld [vmem:[#allocation7 + $0xb0] ss:$8 sps:$4 sm:$0xff]   ;;  %v917_v63 = vld [vmem:[#allocation7 + $0xc4] ss:$8 sps:$4 sm:$0xff]   ;;  %v919_v0 = vld [vmem:[#allocation7 + $0xc0] ss:$8 sps:$4 sm:$0xff]  }
  0x66   :  { %v920_v1 = vld [vmem:[#allocation7 + $0xd4] ss:$8 sps:$4 sm:$0xff]   ;;  %v922_v2 = vld [vmem:[#allocation7 + $0xd0] ss:$8 sps:$4 sm:$0xff]   ;;  %v923_v3 = vld [vmem:[#allocation7 + $0xe4] ss:$8 sps:$4 sm:$0xff]  }
  0x67   :  { %462 = vmatpush1.bf16.msra.mxu1 %v889_v30  ;;  %v925_v4 = vld [vmem:[#allocation7 + $0xe0] ss:$8 sps:$4 sm:$0xff]   ;;  %v926_v5 = vld [vmem:[#allocation7 + $0xf4] ss:$8 sps:$4 sm:$0xff]   ;;  %v928_v6 = vld [vmem:[#allocation7 + $0xf0] ss:$8 sps:$4 sm:$0xff]  }
  0x68   :  { %463 = vmatprep.subr.bf16.mxu1 %v890_v31  ;;  %s1107_s4 = smov [#allocation11]  }
  0x69   :  { %s773_s7 = sshll.u32 %s1107_s4, 4  ;;  %s774_s7 = int_to_ptr.vmem [resolvable:$true] %s773_s7 }
  0x6a   :  { %s1067_s8 = scalar_lea.vmem %s774_s7, 256  ;;  %p1072_p13 = scmp.lt.s32.totalorder %s774_s7, %s774_s7 }
  0x6b   :  { %464 = vmatpush1.bf16.msra.mxu1 %v892_v32  ;;  %p1068_p12 = scmp.ne.s32.totalorder %s774_s7, %s1067_s8  ;;  %p1073_p0 = scmp.lt.s32.totalorder %s1067_s8, %s1067_s8 }
  0x6c   :  { %465 = vmatprep.subr.bf16.mxu1 %v893_v33 }
  0x6d   :  { %p1074_p1 = por %p1073_p0, %p1072_p13 }
  0x6f   :  { %466 = vmatpush1.bf16.msra.mxu1 %v895_v34  ;;  %p1075_p2 = pnand %p1074_p1, %p1068_p12 }
  0x70   :  { %467 = vmatprep.subr.bf16.mxu1 %v896_v35 }
  0x73   :  { %468 = vmatpush1.bf16.msra.mxu1 %v898_v36 }
  0x74   :  { %469 = vmatprep.subr.bf16.mxu1 %v899_v37 }
  0x77   :  { %470 = vmatpush1.bf16.msra.mxu1 %v901_v38 }
  0x78   :  { %471 = vmatprep.subr.bf16.mxu1 %v902_v39 }
  0x7b   :  { %472 = vmatpush1.bf16.msra.mxu1 %v904_v40 }
  0x7c   :  { %473 = vmatprep.subr.bf16.mxu1 %v905_v41 }
  0x7f   :  { %474 = vmatpush1.bf16.msra.mxu1 %v907_v42  ;;  %v94_v42 = vld [vmem:[#allocation10 + $0x3] ss:$8 sm:$0x3] }
  0x80   :  { %475 = vmatprep.subr.bf16.mxu1 %v908_v57 }
  0x83   :  { %476 = vmatpush1.bf16.msra.mxu1 %v910_v58 }
  0x84   :  { %477 = vmatprep.subr.bf16.mxu1 %v911_v59 }
  0x87   :  { %478 = vmatpush1.bf16.msra.mxu1 %v913_v60 }
  0x88   :  { %479 = vmatprep.subr.bf16.mxu1 %v914_v61 }
  0x8b   :  { %480 = vmatpush1.bf16.msra.mxu1 %v916_v62 }
  0x8c   :  { %481 = vmatprep.subr.bf16.mxu1 %v917_v63 }
  0x8f   :  { %482 = vmatpush1.bf16.msra.mxu1 %v919_v0 }
  0x90   :  { %483 = vmatprep.subr.bf16.mxu1 %v920_v1 }
  0x93   :  { %484 = vmatpush1.bf16.msra.mxu1 %v922_v2 }
  0x94   :  { %485 = vmatprep.subr.bf16.mxu1 %v923_v3 }
  0x97   :  { %486 = vmatpush1.bf16.msra.mxu1 %v925_v4 }
  0x98   :  { %487 = vmatprep.subr.bf16.mxu1 %v926_v5 }
  0x9b   :  { %488 = vmatpush1.bf16.msra.mxu1 %v928_v6 }
 0x136   :  { %v176_v15 = vpop.f32.mrb[0].mxu0 }
 0x137   :  { %v177_v16 = vadd.f32 %v176_v15, %v111_v13  ;;  %v178_v17 = vpop.f32.mrb[1].mxu0 }
 0x138   :  { %v179_v18 = vadd.f32 %v178_v17, %v115_v14  ;;  %v180_v19 = vpop.f32.mrb[2].mxu0 }
 0x139   :  { %v182_v20 = vpop.f32.mrb[3].mxu0  ;;  %v181_v21 = vadd.f32 %v180_v19, %v111_v13 }
 0x13a   :  { %v183_v22 = vadd.f32 %v182_v20, %v115_v14  ;;  %v185_v23 = vadd.f32 %v179_v18, %v177_v16  ;;  %v92_v20 = vld [vmem:[#allocation10 + $0x2] ss:$8 sm:$0x3] }
 0x13b   :  { %v241_v25 = vrot.slane %v92_v20, %v1224_v12 }
 0x13c   :  { %186 = vadd.xlane.f32.xlu0 %v185_v23  ;;  %v188_v24 = vadd.f32 %v183_v22, %v181_v21 }
 0x140   :  { %189 = vadd.xlane.f32.xlu0 %v188_v24  ;;  %v237_v24 = vrot.slane %v92_v20, %v1222_v10  ;;  %v941_v20 = vld [vmem:[#allocation8 + $0x70] sm:$0xff]  }
 0x1c9   :  { %v187_v43 = vpop.xlane.xlu0 %186 }
 0x1ca   :  { %v192_v44 = vmul.f32 0.00390625, %v187_v43  ;;  %v290_v43 = vrot.slane %v94_v42, %v1222_v10 }
 0x1cc   :  { %v194_v45 = vsub.f32 %v177_v16, %v192_v44  ;;  %v195_v46 = vsub.f32 %v179_v18, %v192_v44  ;;  %v90_v16 = vld [vmem:[#allocation10 + $0x1] ss:$8 sm:$0x3]  ;;  %v294_v44 = vrot.slane %v94_v42, %v1224_v12 }
 0x1cd   :  { %v190_v47 = vpop.xlane.xlu0 %189  ;;  %v222_v17 = vrot.slane %v90_v16, %v1222_v10  ;;  %v226_v18 = vrot.slane %v90_v16, %v1224_v12  ;;  %v937_v16 = vld [vmem:[#allocation8 + $0x60] sm:$0xff]  }
 0x1ce   :  { %v193_v48 = vmul.f32 0.00390625, %v190_v47  ;;  %v198_v49 = vmul.f32 %v194_v45, %v194_v45  ;;  %v199_v50 = vmul.f32 %v195_v46, %v195_v46 }
 0x1d0   :  { %v196_v51 = vsub.f32 %v181_v21, %v193_v48  ;;  %v197_v52 = vsub.f32 %v183_v22, %v193_v48  ;;  %v202_v53 = vadd.f32 %v199_v50, %v198_v49 }
 0x1d2   :  { %203 = vadd.xlane.f32.xlu1 %v202_v53  ;;  %v200_v54 = vmul.f32 %v196_v51, %v196_v51  ;;  %v201_v55 = vmul.f32 %v197_v52, %v197_v52 }
 0x1d4   :  { %v205_v56 = vadd.f32 %v201_v55, %v200_v54  ;;  %v929_v55 = vld [vmem:[#allocation8 + $0x40] sm:$0xff]  }
 0x1d5   :  { %842 = vmatprep.subr.bf16.mxu0 %v929_v55 }
 0x1d6   :  { %206 = vadd.xlane.f32.xlu1 %v205_v56  ;;  %v930_v56 = vld [vmem:[#allocation8] sm:$0xff]  }
 0x1d7   :  { %843 = vmatpush3.bf16.msra.mxu0 %v930_v56 }
 0x25f   :  { %v204_v7 = vpop.xlane.xlu1 %203 }
 0x260   :  { %v208_v9 = vmul.f32 0.00390625, %v204_v7  ;;  %v931_v7 = vld [vmem:[#allocation8 + $0x48] sm:$0xff]  }
 0x261   :  { %844 = vmatprep.subr.bf16.mxu0 %v931_v7 }
 0x262   :  { %v210_v11 = vadd.f32 1e-05, %v208_v9  ;;  %v932_v9 = vld [vmem:[#allocation8 + $0x8] sm:$0xff]  }
 0x263   :  { %v207_v13 = vpop.xlane.xlu1 %206  ;;  %845 = vmatpush3.bf16.msra.mxu0 %v932_v9 }
 0x264   :  { %945 = vrsqrt.f32 %v210_v11  ;;  %v209_v14 = vmul.f32 0.00390625, %v207_v13  ;;  %v933_v11 = vld [vmem:[#allocation8 + $0x50] sm:$0xff]  }
 0x265   :  { %v934_v13 = vld [vmem:[#allocation8 + $0x10] sm:$0xff]   ;;  %846 = vmatprep.subr.bf16.mxu0 %v933_v11 }
 0x266   :  { %v211_v15 = vadd.f32 1e-05, %v209_v14  ;;  %v935_v14 = vld [vmem:[#allocation8 + $0x58] sm:$0xff]  }
 0x267   :  { %847 = vmatpush3.bf16.msra.mxu0 %v934_v13 }
 0x268   :  { %947 = vrsqrt.f32 %v211_v15  ;;  %v936_v15 = vld [vmem:[#allocation8 + $0x18] sm:$0xff]   ;;  %848 = vmatprep.subr.bf16.mxu0 %v935_v14 }
 0x26b   :  { %849 = vmatpush3.bf16.msra.mxu0 %v936_v15 }
 0x26c   :  { %850 = vmatprep.subr.bf16.mxu0 %v937_v16 }
 0x26e   :  { %v946_v19 = vpop.eup %945 }
 0x26f   :  { %v215_v21 = vmul.f32 %v946_v19, %v195_v46  ;;  %v214_v22 = vmul.f32 %v946_v19, %v194_v45  ;;  %v940_v19 = vld [vmem:[#allocation8 + $0x28] sm:$0xff]  }
 0x271   :  { %v230_v23 = vmul.f32 %v226_v18, %v215_v21  ;;  %v229_v26 = vmul.f32 %v222_v17, %v214_v22  ;;  %v942_v21 = vld [vmem:[#allocation8 + $0x30] sm:$0xff]   ;;  %v943_v22 = vld [vmem:[#allocation8 + $0x78] sm:$0xff]  }
 0x272   :  { %v948_v27 = vpop.eup %947 }
 0x273   :  { %v217_v28 = vmul.f32 %v948_v27, %v197_v52  ;;  %v216_v29 = vmul.f32 %v948_v27, %v196_v51  ;;  %v245_v31 = vadd.f32 %v241_v25, %v230_v23  ;;  %v244_v33 = vadd.f32 %v237_v24, %v229_v26  ;;  %v944_v23 = vld [vmem:[#allocation8 + $0x38] sm:$0xff]  }
 0x275   :  { %v232_v30 = vmul.f32 %v226_v18, %v217_v28  ;;  %v231_v32 = vmul.f32 %v222_v17, %v216_v29  ;;  %v249_v36 = vmax.f32 %v245_v31, 0.0  ;;  %v248_v38 = vmax.f32 %v244_v33, 0.0  ;;  %v938_v17 = vld [vmem:[#allocation8 + $0x20] sm:$0xff]   ;;  %v939_v18 = vld [vmem:[#allocation8 + $0x68] sm:$0xff]  }
 0x276   :  { %851 = vmatpush3.bf16.msra.mxu0 %v938_v17  ;;  %v98_v31 = vld [vmem:[#allocation10 + $0x5] ss:$8 sm:$0x3] }
 0x277   :  { %v247_v34 = vadd.f32 %v241_v25, %v232_v30  ;;  %v246_v35 = vadd.f32 %v237_v24, %v231_v32  ;;  %852 = vmatprep.subr.bf16.mxu0 %v939_v18  ;;  %v96_v30 = vld [vmem:[#allocation10 + $0x4] ss:$8 sm:$0x3] }
 0x278   :  { %v536_v32 = vrot.slane %v96_v30, %v1222_v10  ;;  %v540_v33 = vrot.slane %v96_v30, %v1224_v12 }
 0x279   :  { %v251_v37 = vmax.f32 %v247_v34, 0.0  ;;  %v250_v39 = vmax.f32 %v246_v35, 0.0 }
 0x27a   :  { %853 = vmatpush3.bf16.msra.mxu0 %v940_v19 }
 0x27b   :  { %v253_v40 = vpack.c.bf16 %v251_v37, %v249_v36  ;;  %v252_v41 = vpack.c.bf16 %v250_v39, %v248_v38  ;;  %854 = vmatprep.subr.bf16.mxu0 %v941_v20  ;;  %v551_v37 = vrot.slane %v98_v31, %v1222_v10  ;;  %v555_v38 = vrot.slane %v98_v31, %v1224_v12  ;;  %v99_v12 = vld [vmem:[#allocation10 + $0x6] ss:$0 sm:$0xff] }
 0x27d   :  { %489 = vmatprep.mubr.bf16.mxu1 %v253_v40 }
 0x27e   :  { %490 = vmatmul.mubr.bf16.vlgmr.msra.gmra.mrb[0].mxu1 %v252_v41  ;;  %855 = vmatpush3.bf16.msra.mxu0 %v942_v21 }
 0x27f   :  { %856 = vmatprep.subr.bf16.mxu0 %v943_v22 }
 0x282   :  { %857 = vmatpush3.bf16.msra.mxu0 %v944_v23 }
 0x351   :  { %v491_v45 = vpop.f32.mrb[0].mxu1 }
 0x352   :  { %v492_v46 = vadd.f32 %v491_v45, %v290_v43  ;;  %v493_v47 = vpop.f32.mrb[1].mxu1 }
 0x353   :  { %v494_v48 = vadd.f32 %v493_v47, %v294_v44  ;;  %v495_v49 = vpop.f32.mrb[2].mxu1 }
 0x354   :  { %v496_v50 = vadd.f32 %v495_v49, %v290_v43  ;;  %v497_v51 = vpop.f32.mrb[3].mxu1 }
 0x355   :  { %v498_v52 = vadd.f32 %v497_v51, %v294_v44  ;;  %v500_v53 = vadd.f32 %v494_v48, %v492_v46 }
 0x357   :  { %501 = vadd.xlane.f32.xlu0 %v500_v53  ;;  %v503_v54 = vadd.f32 %v498_v52, %v496_v50 }
 0x359   :  { %504 = vadd.xlane.f32.xlu1 %v503_v54 }
 0x3e4   :  { %v502_v57 = vpop.xlane.xlu0 %501 }
 0x3e5   :  { %v506_v58 = vmul.f32 0.00390625, %v502_v57 }
 0x3e6   :  { %v505_v59 = vpop.xlane.xlu1 %504 }
 0x3e7   :  { %v508_v60 = vsub.f32 %v492_v46, %v506_v58  ;;  %v509_v61 = vsub.f32 %v494_v48, %v506_v58  ;;  %v507_v62 = vmul.f32 0.00390625, %v505_v59 }
 0x3e9   :  { %v510_v63 = vsub.f32 %v496_v50, %v507_v62  ;;  %v511_v0 = vsub.f32 %v498_v52, %v507_v62  ;;  %v512_v1 = vmul.f32 %v508_v60, %v508_v60  ;;  %v513_v2 = vmul.f32 %v509_v61, %v509_v61 }
 0x3eb   :  { %v516_v3 = vadd.f32 %v513_v2, %v512_v1  ;;  %v514_v4 = vmul.f32 %v510_v63, %v510_v63  ;;  %v515_v5 = vmul.f32 %v511_v0, %v511_v0 }
 0x3ed   :  { %517 = vadd.xlane.f32.xlu0 %v516_v3  ;;  %v519_v6 = vadd.f32 %v515_v5, %v514_v4  ;;  %v738_v3 = vand.u32 127, %v108_v8 }
 0x3ef   :  { %520 = vadd.xlane.f32.xlu1 %v519_v6  ;;  %vm739_vm1 = vcmp.eq.s32.totalorder %v738_v3, 1  ;;  %vm740_vm3 = vcmp.eq.s32.totalorder %v738_v3, 3 }
 0x3f0   :  { %vm741_vm7 = vmor %vm739_vm1, %vm740_vm3 }
 0x47a   :  { %v518_v24 = vpop.xlane.xlu0 %517 }
 0x47b   :  { %v522_v25 = vmul.f32 0.00390625, %v518_v24 }
 0x47c   :  { %v521_v26 = vpop.xlane.xlu1 %520 }
 0x47d   :  { %v524_v27 = vadd.f32 1e-05, %v522_v25  ;;  %v523_v28 = vmul.f32 0.00390625, %v521_v26 }
 0x47f   :  { %949 = vrsqrt.f32 %v524_v27  ;;  %v525_v29 = vadd.f32 1e-05, %v523_v28 }
 0x481   :  { %951 = vrsqrt.f32 %v525_v29 }
 0x489   :  { %v950_v34 = vpop.eup %949 }
 0x48a   :  { %v528_v35 = vmul.f32 %v950_v34, %v508_v60  ;;  %v529_v36 = vmul.f32 %v950_v34, %v509_v61 }
 0x48b   :  { %v952_v39 = vpop.eup %951 }
 0x48c   :  { %v530_v40 = vmul.f32 %v952_v39, %v510_v63  ;;  %v531_v41 = vmul.f32 %v952_v39, %v511_v0  ;;  %v544_v42 = vmul.f32 %v540_v33, %v529_v36  ;;  %v543_v43 = vmul.f32 %v536_v32, %v528_v35 }
 0x48e   :  { %v546_v44 = vmul.f32 %v540_v33, %v531_v41  ;;  %v559_v45 = vadd.f32 %v555_v38, %v544_v42  ;;  %v545_v46 = vmul.f32 %v536_v32, %v530_v40  ;;  %v558_v47 = vadd.f32 %v551_v37, %v543_v43 }
 0x490   :  { %v561_v48 = vadd.f32 %v555_v38, %v546_v44  ;;  %v560_v49 = vadd.f32 %v551_v37, %v545_v46  ;;  %v563_v50 = vmax.f32 %v559_v45, 0.0  ;;  %v562_v52 = vmax.f32 %v558_v47, 0.0 }
 0x492   :  { %v565_v51 = vmax.f32 %v561_v48, 0.0  ;;  %v564_v53 = vmax.f32 %v560_v49, 0.0 }
 0x494   :  { %v567_v54 = vpack.c.bf16 %v565_v51, %v563_v50  ;;  %v566_v55 = vpack.c.bf16 %v564_v53, %v562_v52 }
 0x496   :  { %728 = vmatprep.mubr.bf16.mxu0 %v567_v54 }
 0x497   :  { %729 = vmatmul.mubr.bf16.vlgmr.msra.gmra.mrb[4].mxu0 %v566_v55 }
 0x56a   :  { %v858_v10 = vpop.f32.mrb[4].mxu0 }
 0x56b   :  { %v859_v56 = vpop.f32.mrb[5].mxu0 }
 0x56c   :  { %v860_v57 = vadd.f32 %v859_v56, %v858_v10  ;;  %v861_v58 = vpop.f32.mrb[6].mxu0 }
 0x56d   :  { %v862_v59 = vpop.f32.mrb[7].mxu0 }
 0x56e   :  { %v731_v60 = vadd.f32 %v860_v57, %v99_v12  ;;  %v863_v61 = vadd.f32 %v862_v59, %v861_v58 }
 0x570   :  { %v742_v62 = vmul.f32 %v731_v60, %v731_v60  ;;  %v734_v63 = vadd.f32 %v863_v61, %v99_v12 }
 0x572   :  { %v744_v0 = vadd.f32 1.0, %v742_v62  ;;  %v743_v1 = vmul.f32 %v734_v63, %v734_v63 }
 0x574   :  { %953 = vrsqrt.f32 %v744_v0  ;;  %v745_v2 = vadd.f32 1.0, %v743_v1  ;;  %vm748_vm2 = vcmp.eq.f32.partialorder %v744_v0, inf  ;;  %v751_v7 = vand.u32 2147483648, %v744_v0 }
 0x575   :  { %vm750_vm4 = vcmp.eq.f32.partialorder %v744_v0, 0.0 }
 0x576   :  { %955 = vrsqrt.f32 %v745_v2  ;;  %vm755_vm5 = vcmp.eq.f32.partialorder %v745_v2, inf  ;;  %v758_v14 = vand.u32 2147483648, %v745_v2  ;;  %vm757_vm6 = vcmp.eq.f32.partialorder %v745_v2, 0.0 }
 0x57e   :  { %v954_v4 = vpop.eup %953 }
 0x57f   :  { %v747_v5 = vmul.f32 %v954_v4, %v744_v0 }
 0x580   :  { %v956_v6 = vpop.eup %955 }
 0x581   :  { %v749_v9 = vsel %vm748_vm2, %v744_v0, %v747_v5  ;;  %v754_v11 = vmul.f32 %v956_v6, %v745_v2 }
 0x582   :  { %v752_v13 = vsel %vm750_vm4, %v751_v7, %v749_v9 }
 0x583   :  { %v756_v15 = vsel %vm755_vm5, %v745_v2, %v754_v11  ;;  %v840_v16 = vadd.f32 -1.0, %v752_v13 }
 0x584   :  { %v759_v17 = vsel %vm757_vm6, %v758_v14, %v756_v15 }
 0x585   :  { %v841_v18 = vadd.f32 -1.0, %v759_v17  ;;  %v762_v8 = vmax.f32 %v840_v16, 0.01 }
 0x587   :  { %v763_v19 = vmax.f32 %v841_v18, 0.01  ;;  %v764_v20 = vsel %vm741_vm7, %v762_v8, %v731_v60 }
 0x588   :  { %766 = vst [vmem:[#allocation11] sm:$0xff] %v764_v20 }
 0x589   :  { %v765_v21 = vsel %vm741_vm7, %v763_v19, %v734_v63 }
 0x58a   :  { %767 = vst [vmem:[#allocation11 + $0x8] sm:$0xff] %v765_v21 }
 0x58b   :  { %1078 = shalt.err (!%p1075_p2)
}
 0x58c   :  { %s1079_s9 = scalar_lea.hbm %s1259_s5, 256 }
 0x58d   :  { %p1080_p3 = scmp.ne.s32.totalorder %s1259_s5, %s1079_s9  ;;  %p1083_p4 = scmp.lt.u32.totalorder %s1079_s9, %s1259_s5 }
 0x58f   :  { %p1085_p5 = pnand %p1083_p4, %p1080_p3 }
 0x591   :  { %1088 = shalt.err (!%p1085_p5)
}
 0x592   :  { %779 = dma.vmem_to_hbm [thread:$0]  %s774_s7, 256, %s1259_s5, [#allocation4], %s1099_s30, %s1099_s30, %s1100_s6  }
 0x593   :  { %1095 = dma.done.wait [#allocation4], 256  }
 0x594   :  { %1096 = vsyncadd [#allocation4], 4294967040 }
 0x595   :  { %783 = vsyncpa [#allocation3], 1 }
 0x596   :  { %784 = vsyncpa [#allocation6], 1 }
 0x597   :  { %785 = vsyncpa [#allocation9], 1 }
 0x598   :  { %786 = vsyncpa [#allocation4], 1 }

</bundles_post_ra>
